<compile_context>
chip_gen: v7x
topology: tpu7x:2x2x1
jax: 0.10.0
libtpu: 0.0.40
codegen_flags: <defaults>
</compile_context>

<pallas_src>
import math

import jax
import jax.numpy as jnp
from jax import lax
from jax.experimental import pallas as pl
from jax.experimental.pallas import tpu as pltpu

EPS = 1e-5
NEG_SLOPE = 0.2
LANE = 128


def _largest_divisor_leq(n, cap):
    cap = max(1, min(n, cap))
    for t in range(cap, 0, -1):
        if n % t == 0:
            return t
    return 1


def _vmem_budget_bytes():
    """Generation-aware VMEM budget (~80% of per-core physical VMEM)."""
    try:
        cap = int(pltpu.get_tpu_info().vmem_capacity_bytes)
    except Exception:
        cap = 64 * 2**20            # conservative fallback (v7x-sized)
    return int(min(max(int(cap * 0.80), 32 * 2**20), 112 * 2**20))


# ---------------------------------------------------------------------------
# Phase 1: 3x3/stride-s conv as nc*nc per-tap MXU matmuls + per-tile BN partials
# ---------------------------------------------------------------------------
def _make_conv_stats_kernel(nc, Cs, Wo, Ho, tile_ho, Cp, needs_mask):
    rows = tile_ho * Wo

    def kernel(xs_ref, w_ref, y_ref, sum_ref, ssq_ref):
        h0 = pl.program_id(1) * tile_ho

        # nc*nc per-tap matmuls accumulated in f32.  Each tap is a contiguous
        # (tile_ho, Wo, Cs) window of the space-to-depth input (bf16 on the MXU,
        # f32 accumulation); no lane-dim concat / K-wide patch materialization.
        acc = jnp.zeros((rows, Cp), jnp.float32)
        for dh in range(nc):
            for dw in range(nc):
                tap = xs_ref[0, pl.ds(h0 + dh, tile_ho), dw:dw + Wo, :]
                acc = acc + jnp.dot(tap.reshape(rows, Cs), w_ref[dh * nc + dw],
                                    preferred_element_type=jnp.float32)

        # Conv bias intentionally omitted: a per-channel constant cancels
        # exactly under training-mode BatchNorm.

        # Per-tile BN partial statistics (f32).  Rows beyond the valid Ho (only
        # present when Ho was padded up to R*tile_ho) are masked out of stats.
        if needs_mask:
            row_i = lax.broadcasted_iota(jnp.int32, (rows, 1), 0)
            valid = (h0 + row_i // Wo) < Ho
            ys = jnp.where(valid, acc, 0.0)
        else:
            ys = acc
        sum_ref[...] = jnp.sum(ys, axis=0, keepdims=True).reshape(sum_ref.shape)
        ssq_ref[...] = jnp.sum(ys * ys, axis=0, keepdims=True).reshape(ssq_ref.shape)

        # Lane-dense bf16 store of the conv slab (halves slab HBM traffic).
        y_ref[...] = acc.astype(y_ref.dtype)

    return kernel


# ---------------------------------------------------------------------------
# Phase 2: streaming scale/shift (precomputed BN affine) + LeakyReLU
# ---------------------------------------------------------------------------
def _bn_act_kernel(y_ref, scale_ref, shift_ref, o_ref):
    y = y_ref[...].astype(jnp.float32) * scale_ref[...] + shift_ref[...]
    o_ref[...] = jnp.where(y >= 0, y, NEG_SLOPE * y)


def conv_block_nhwc(x_nhwc, w_hwio, bias, gamma, beta, stride):
    """Fused Conv3x3(stride, pad=1, bias) + BatchNorm2d(train) + LeakyReLU(0.2).

    x_nhwc: (N, H, W, Cin) f32; w_hwio: (3, 3, Cin, Cout).  Returns NHWC f32.
    `bias` is accepted for API parity but not applied in compute: a per-channel
    pre-BN constant cancels exactly under training-mode BatchNorm.
    """
    del bias
    N, H, W, Cin = x_nhwc.shape
    Cout = w_hwio.shape[-1]
    s = int(stride)
    assert w_hwio.shape[:2] == (3, 3)
    assert s in (1, 2), "SRGAN ConvBlock uses stride 1 or 2"

    Ho = (H + 2 - 3) // s + 1
    Wo = (W + 2 - 3) // s + 1
    nc = -(-3 // s)                      # ceil(3/s): coarse taps per spatial dim
    Hc, Wc = Ho + nc - 1, Wo + nc - 1
    Cs = s * s * Cin                     # space-to-depth channel width
    Cp = ((Cout + LANE - 1) // LANE) * LANE   # lane-dense padded Cout

    # ---- generation-aware VMEM budget and phase-1 tiling --------------------
    budget = _vmem_budget_bytes()
    fixed = (2 * Hc * Wc * Cs * 2              # double-buffered resident sample
             + 2 * nc * nc * Cs * Cp * 2       # folded per-tap weights
             + 4 * 2**20)                      # temporaries / margin
    per_row = 2 * Cp * 2 + Cp * 4 + 3 * Cs * 2  # y dbuf (bf16) + f32 acc + taps
    avail = max(budget - fixed, 2 * 2**20)
    cap_ho = max(1, min(Ho,
                        int(avail // per_row) // max(Wo, 1),
                        8192 // max(Wo, 1)))

    # Keep tile_ho * Wo a multiple of 8 (sublane-aligned stores / reshapes).
    g = 8 // math.gcd(Wo, 8)
    target_ho = max(g, (cap_ho // g) * g)
    best_div = 0
    for d in range(min(Ho, target_ho), 0, -1):
        if Ho % d == 0 and (d * Wo) % 8 == 0:
            best_div = d
            break
    tile_ho = best_div if best_div * 2 >= target_ho else target_ho
    R = -(-Ho // tile_ho)
    Ho_pad = R * tile_ho
    needs_mask = Ho_pad != Ho
    tile_rows = tile_ho * Wo
    Hcp = Ho_pad + nc - 1

    # ---- wrapper-side layout prep: space-to-depth => contiguous kernel reads
    xp = jnp.pad(x_nhwc, ((0, 0), (1, nc * s), (1, nc * s), (0, 0)))
    xp = xp[:, :Hc * s, :Wc * s, :]
    xs = (xp.reshape(N, Hc, s, Wc, s, Cin)
            .transpose(0, 1, 3, 2, 4, 5)
            .reshape(N, Hc, Wc, Cs))
    xs = jnp.pad(xs, ((0, 0), (0, Hcp - Hc), (0, 0), (0, 0))).astype(jnp.bfloat16)

    # Fold the 3x3 weights into nc*nc per-tap (Cs, Cp) matrices matching the
    # coarse-tap / phase / channel order the kernel uses.
    wp = jnp.pad(w_hwio, ((0, nc * s - 3), (0, nc * s - 3), (0, 0), (0, 0)))
    w3 = (wp.reshape(nc, s, nc, s, Cin, Cout)
            .transpose(0, 2, 1, 3, 4, 5)
            .reshape(nc * nc, Cs, Cout))
    w3 = jnp.pad(w3, ((0, 0), (0, 0), (0, Cp - Cout))).astype(jnp.bfloat16)

    vmem_limit = int(budget)

    # ---- phase 1: conv + per-(n, row-block) BN partial sums -----------------
    conv_kernel = _make_conv_stats_kernel(nc, Cs, Wo, Ho, tile_ho, Cp, needs_mask)
    y2d, sums, ssqs = pl.pallas_call(
        conv_kernel,
        grid=(N, R),
        in_specs=[
            pl.BlockSpec((1, Hcp, Wc, Cs), lambda n, r: (n, 0, 0, 0)),
            pl.BlockSpec((nc * nc, Cs, Cp), lambda n, r: (0, 0, 0)),
        ],
        out_specs=(
            pl.BlockSpec((tile_rows, Cp), lambda n, r: (n * R + r, 0)),
            pl.BlockSpec((1, 1, Cp), lambda n, r: (n * R + r, 0, 0)),
            pl.BlockSpec((1, 1, Cp), lambda n, r: (n * R + r, 0, 0)),
        ),
        out_shape=(
            jax.ShapeDtypeStruct((N * R * tile_rows, Cp), jnp.bfloat16),
            jax.ShapeDtypeStruct((N * R, 1, Cp), jnp.float32),
            jax.ShapeDtypeStruct((N * R, 1, Cp), jnp.float32),
        ),
        compiler_params=pltpu.CompilerParams(
            dimension_semantics=("parallel", "parallel"),
            vmem_limit_bytes=vmem_limit,
        ),
    )(xs, w3)

    # ---- tiny XLA glue: global stats -> BN scale/shift ----------------------
    cnt = float(N * Ho * Wo)
    tot = jnp.sum(sums, axis=(0, 1))                   # (Cp,)
    totsq = jnp.sum(ssqs, axis=(0, 1))                 # (Cp,)
    mean = tot / cnt
    var = jnp.maximum(totsq / cnt - mean * mean, 0.0)  # biased variance (f32)
    inv = lax.rsqrt(var + EPS)
    gpad = jnp.pad(gamma.astype(jnp.float32), (0, Cp - Cout))
    bpad = jnp.pad(beta.astype(jnp.float32), (0, Cp - Cout))
    scale = (gpad * inv).reshape(1, Cp)
    shift = (bpad - mean * gpad * inv).reshape(1, Cp)

    # ---- phase 2: streaming normalize + LeakyReLU (own, larger tiles) -------
    total_rows = N * R * tile_rows
    per_row2 = 2 * Cp * 2 + 2 * Cp * 4 + 2 * Cp * 4
    cap2_rows = max(tile_rows, int(max(budget - 2 * 2**20, 2**20) // per_row2))
    m = _largest_divisor_leq(N * R, max(1, min(cap2_rows, 8192) // tile_rows))
    tile2_rows = tile_rows * m
    G2 = (N * R) // m

    out2d = pl.pallas_call(
        _bn_act_kernel,
        grid=(G2,),
        in_specs=[
            pl.BlockSpec((tile2_rows, Cp), lambda i: (i, 0)),
            pl.BlockSpec((1, Cp), lambda i: (0, 0)),
            pl.BlockSpec((1, Cp), lambda i: (0, 0)),
        ],
        out_specs=pl.BlockSpec((tile2_rows, Cp), lambda i: (i, 0)),
        out_shape=jax.ShapeDtypeStruct((total_rows, Cp), jnp.float32),
        compiler_params=pltpu.CompilerParams(
            dimension_semantics=("parallel",),
            vmem_limit_bytes=vmem_limit,
        ),
    )(y2d, scale, shift)

    # NOTE: in a fused multi-layer pipeline the lane/row padded slab would be
    # consumed directly by the next ConvBlock; the unpad here only exists to
    # match the nn.Module's exact output shape.
    return out2d.reshape(N, Ho_pad, Wo, Cp)[:, :Ho, :, :Cout]


def conv_block(x_nchw, w_hwio, bias, gamma, beta, stride):
    """NCHW adapter (layout glue only). Prefer conv_block_nhwc between layers."""
    out = conv_block_nhwc(jnp.transpose(x_nchw, (0, 2, 3, 1)),
                          w_hwio, bias, gamma, beta, stride)
    return jnp.transpose(out, (0, 3, 1, 2))


def reference(x_nchw, w_hwio, bias, gamma, beta, stride):
    x_nhwc = jnp.transpose(x_nchw, (0, 2, 3, 1))
    y = lax.conv_general_dilated(
        x_nhwc, w_hwio,
        window_strides=(stride, stride),
        padding=((1, 1), (1, 1)),
        dimension_numbers=("NHWC", "HWIO", "NHWC"),
    ) + bias[None, None, None, :]
    mean = jnp.mean(y, axis=(0, 1, 2), keepdims=True)
    var = jnp.mean((y - mean) ** 2, axis=(0, 1, 2), keepdims=True)
    y = (y - mean) * lax.rsqrt(var + EPS)
    y = y * gamma[None, None, None, :] + beta[None, None, None, :]
    y = jnp.where(y >= 0, y, NEG_SLOPE * y)
    return jnp.transpose(y, (0, 3, 1, 2))


if __name__ == "__main__":
    key = jax.random.PRNGKey(0)
    k_x, k_w, k_b, k_g, k_be = jax.random.split(key, 5)

    N, Cin, Cout, H, W = 2, 4, 8, 16, 16
    stride = 2

    x = jax.random.normal(k_x, (N, Cin, H, W), jnp.float32)
    # Deterministic parameter init (shapes per nn.Conv2d / nn.BatchNorm2d).
    w = jax.random.normal(k_w, (3, 3, Cin, Cout), jnp.float32) * 0.1   # HWIO
    b = jax.random.normal(k_b, (Cout,), jnp.float32) * 0.1
    gamma = 1.0 + 0.1 * jax.random.normal(k_g, (Cout,), jnp.float32)
    beta = 0.1 * jax.random.normal(k_be, (Cout,), jnp.float32)

    out = conv_block(x, w, b, gamma, beta, stride)
    jax.block_until_ready(out)

    ref = reference(x, w, b, gamma, beta, stride)
    Ho = (H + 2 - 3) // stride + 1
    Wo = (W + 2 - 3) // stride + 1
    assert out.shape == (N, Cout, Ho, Wo)
    # bf16 MXU inputs + bf16 intermediate slab (f32 stats / accumulation) vs the
    # pure-f32 reference => bf16-appropriate tolerance (post-BN ~unit scale).
    assert jnp.allclose(out, ref, atol=5e-2, rtol=5e-2), "mismatch vs reference"

    print("KERNEL_OK")
</pallas_src>

<mosaic_0001>
module attributes {stable_mosaic.version = 11 : i64} {
  func.func @kernel(%arg0: i32, %arg1: i32, %arg2: memref<1x9x9x16xbf16, #tpu.memory_space<vmem>>, %arg3: memref<4x16x128xbf16, #tpu.memory_space<vmem>>, %arg4: memref<64x128xbf16, #tpu.memory_space<vmem>>, %arg5: memref<1x1x128xf32, #tpu.memory_space<vmem>>, %arg6: memref<1x1x128xf32, #tpu.memory_space<vmem>>) attributes {dimension_semantics = [#tpu.dimension_semantics<parallel>, #tpu.dimension_semantics<parallel>], iteration_bounds = array<i64: 2, 1>, scalar_prefetch = 0 : i64, scratch_operands = 0 : i64, tpu.core_type = #tpu.core_type<tc>, window_params = [{transform_indices = @transform_0, window_bounds = array<i64: 1, 9, 9, 16>}, {pipeline_mode = #tpu.pipeline_mode<synchronous>, transform_indices = @transform_1, window_bounds = array<i64: 4, 16, 128>}, {transform_indices = @transform_2, window_bounds = array<i64: 64, 128>}, {transform_indices = @transform_3, window_bounds = array<i64: 1, 1, 128>}, {transform_indices = @transform_4, window_bounds = array<i64: 1, 1, 128>}]} {
    %c8_i32 = arith.constant 8 : i32
    %0 = arith.muli %arg1, %c8_i32 : i32
    %cst = arith.constant 0.000000e+00 : f32
    %1 = vector.broadcast %cst : f32 to vector<64x128xf32>
    %c0_i32 = arith.constant 0 : i32
    %2 = arith.addi %0, %c0_i32 : i32
    %c0 = arith.constant 0 : index
    %3 = arith.index_cast %2 : i32 to index
    %c0_0 = arith.constant 0 : index
    %c0_1 = arith.constant 0 : index
    %4 = vector.load %arg2[%c0, %3, %c0_0, %c0_1] : memref<1x9x9x16xbf16, #tpu.memory_space<vmem>>, vector<1x8x8x16xbf16>
    %5 = vector.shape_cast %4 : vector<1x8x8x16xbf16> to vector<8x8x16xbf16>
    %6 = vector.shape_cast %5 : vector<8x8x16xbf16> to vector<64x16xbf16>
    %c0_2 = arith.constant 0 : index
    %c0_3 = arith.constant 0 : index
    %c0_4 = arith.constant 0 : index
    %7 = vector.load %arg3[%c0_2, %c0_3, %c0_4] : memref<4x16x128xbf16, #tpu.memory_space<vmem>>, vector<1x16x128xbf16>
    %8 = vector.shape_cast %7 : vector<1x16x128xbf16> to vector<16x128xbf16>
    %cst_5 = arith.constant dense<0.000000e+00> : vector<64x128xf32>
    %9 = tpu.matmul %6, %8, %cst_5 {dimension_numbers = #tpu.dot_dimension_numbers<[1], [0], [0], [1], [0, 0, 1, 1], [], []>} : vector<64x16xbf16>, vector<16x128xbf16>, vector<64x128xf32> -> vector<64x128xf32>
    %10 = arith.addf %1, %9 : vector<64x128xf32>
    %c0_i32_6 = arith.constant 0 : i32
    %11 = arith.addi %0, %c0_i32_6 : i32
    %c0_7 = arith.constant 0 : index
    %12 = arith.index_cast %11 : i32 to index
    %c1 = arith.constant 1 : index
    %c0_8 = arith.constant 0 : index
    %13 = vector.load %arg2[%c0_7, %12, %c1, %c0_8] : memref<1x9x9x16xbf16, #tpu.memory_space<vmem>>, vector<1x8x8x16xbf16>
    %14 = vector.shape_cast %13 : vector<1x8x8x16xbf16> to vector<8x8x16xbf16>
    %15 = vector.shape_cast %14 : vector<8x8x16xbf16> to vector<64x16xbf16>
    %c1_9 = arith.constant 1 : index
    %c0_10 = arith.constant 0 : index
    %c0_11 = arith.constant 0 : index
    %16 = vector.load %arg3[%c1_9, %c0_10, %c0_11] : memref<4x16x128xbf16, #tpu.memory_space<vmem>>, vector<1x16x128xbf16>
    %17 = vector.shape_cast %16 : vector<1x16x128xbf16> to vector<16x128xbf16>
    %cst_12 = arith.constant dense<0.000000e+00> : vector<64x128xf32>
    %18 = tpu.matmul %15, %17, %cst_12 {dimension_numbers = #tpu.dot_dimension_numbers<[1], [0], [0], [1], [0, 0, 1, 1], [], []>} : vector<64x16xbf16>, vector<16x128xbf16>, vector<64x128xf32> -> vector<64x128xf32>
    %19 = arith.addf %10, %18 : vector<64x128xf32>
    %c1_i32 = arith.constant 1 : i32
    %20 = arith.addi %0, %c1_i32 : i32
    %c0_13 = arith.constant 0 : index
    %21 = arith.index_cast %20 : i32 to index
    %c0_14 = arith.constant 0 : index
    %c0_15 = arith.constant 0 : index
    %22 = vector.load %arg2[%c0_13, %21, %c0_14, %c0_15] : memref<1x9x9x16xbf16, #tpu.memory_space<vmem>>, vector<1x8x8x16xbf16>
    %23 = vector.shape_cast %22 : vector<1x8x8x16xbf16> to vector<8x8x16xbf16>
    %24 = vector.shape_cast %23 : vector<8x8x16xbf16> to vector<64x16xbf16>
    %c2 = arith.constant 2 : index
    %c0_16 = arith.constant 0 : index
    %c0_17 = arith.constant 0 : index
    %25 = vector.load %arg3[%c2, %c0_16, %c0_17] : memref<4x16x128xbf16, #tpu.memory_space<vmem>>, vector<1x16x128xbf16>
    %26 = vector.shape_cast %25 : vector<1x16x128xbf16> to vector<16x128xbf16>
    %cst_18 = arith.constant dense<0.000000e+00> : vector<64x128xf32>
    %27 = tpu.matmul %24, %26, %cst_18 {dimension_numbers = #tpu.dot_dimension_numbers<[1], [0], [0], [1], [0, 0, 1, 1], [], []>} : vector<64x16xbf16>, vector<16x128xbf16>, vector<64x128xf32> -> vector<64x128xf32>
    %28 = arith.addf %19, %27 : vector<64x128xf32>
    %c1_i32_19 = arith.constant 1 : i32
    %29 = arith.addi %0, %c1_i32_19 : i32
    %c0_20 = arith.constant 0 : index
    %30 = arith.index_cast %29 : i32 to index
    %c1_21 = arith.constant 1 : index
    %c0_22 = arith.constant 0 : index
    %31 = vector.load %arg2[%c0_20, %30, %c1_21, %c0_22] : memref<1x9x9x16xbf16, #tpu.memory_space<vmem>>, vector<1x8x8x16xbf16>
    %32 = vector.shape_cast %31 : vector<1x8x8x16xbf16> to vector<8x8x16xbf16>
    %33 = vector.shape_cast %32 : vector<8x8x16xbf16> to vector<64x16xbf16>
    %c3 = arith.constant 3 : index
    %c0_23 = arith.constant 0 : index
    %c0_24 = arith.constant 0 : index
    %34 = vector.load %arg3[%c3, %c0_23, %c0_24] : memref<4x16x128xbf16, #tpu.memory_space<vmem>>, vector<1x16x128xbf16>
    %35 = vector.shape_cast %34 : vector<1x16x128xbf16> to vector<16x128xbf16>
    %cst_25 = arith.constant dense<0.000000e+00> : vector<64x128xf32>
    %36 = tpu.matmul %33, %35, %cst_25 {dimension_numbers = #tpu.dot_dimension_numbers<[1], [0], [0], [1], [0, 0, 1, 1], [], []>} : vector<64x16xbf16>, vector<16x128xbf16>, vector<64x128xf32> -> vector<64x128xf32>
    %37 = arith.addf %28, %36 : vector<64x128xf32>
    %cst_26 = arith.constant dense<0.000000e+00> : vector<128xf32>
    %38 = vector.multi_reduction <add>, %37, %cst_26 [0] : vector<64x128xf32> to vector<128xf32>
    %39 = vector.shape_cast %38 : vector<128xf32> to vector<1x128xf32>
    %40 = vector.shape_cast %39 : vector<1x128xf32> to vector<1x1x128xf32>
    %c0_27 = arith.constant 0 : index
    %c0_28 = arith.constant 0 : index
    %c0_29 = arith.constant 0 : index
    %41 = vector.load %arg5[%c0_27, %c0_28, %c0_29] : memref<1x1x128xf32, #tpu.memory_space<vmem>>, vector<1x1x128xf32>
    tpu.vector_store %arg5[%c0_27, %c0_28, %c0_29], %40 {strides = array<i32>} : memref<1x1x128xf32, #tpu.memory_space<vmem>>, vector<1x1x128xf32>,
    %42 = arith.mulf %37, %37 : vector<64x128xf32>
    %cst_30 = arith.constant dense<0.000000e+00> : vector<128xf32>
    %43 = vector.multi_reduction <add>, %42, %cst_30 [0] : vector<64x128xf32> to vector<128xf32>
    %44 = vector.shape_cast %43 : vector<128xf32> to vector<1x128xf32>
    %45 = vector.shape_cast %44 : vector<1x128xf32> to vector<1x1x128xf32>
    %c0_31 = arith.constant 0 : index
    %c0_32 = arith.constant 0 : index
    %c0_33 = arith.constant 0 : index
    %46 = vector.load %arg6[%c0_31, %c0_32, %c0_33] : memref<1x1x128xf32, #tpu.memory_space<vmem>>, vector<1x1x128xf32>
    tpu.vector_store %arg6[%c0_31, %c0_32, %c0_33], %45 {strides = array<i32>} : memref<1x1x128xf32, #tpu.memory_space<vmem>>, vector<1x1x128xf32>,
    %47 = arith.truncf %37 : vector<64x128xf32> to vector<64x128xbf16>
    %c0_34 = arith.constant 0 : index
    %c0_35 = arith.constant 0 : index
    %48 = vector.load %arg4[%c0_34, %c0_35] : memref<64x128xbf16, #tpu.memory_space<vmem>>, vector<64x128xbf16>
    tpu.vector_store %arg4[%c0_34, %c0_35], %47 {strides = array<i32>} : memref<64x128xbf16, #tpu.memory_space<vmem>>, vector<64x128xbf16>,
    return
  }
  func.func @transform_0(%arg0: i32, %arg1: i32) -> (i32, i32, i32, i32) {
    %c0_i32 = arith.constant 0 : i32
    %c0_i32_0 = arith.constant 0 : i32
    %c0_i32_1 = arith.constant 0 : i32
    %c0_i32_2 = arith.constant 0 : i32
    return %arg0, %c0_i32, %c0_i32_0, %c0_i32_1 : i32, i32, i32, i32
  }
  func.func @transform_1(%arg0: i32, %arg1: i32) -> (i32, i32, i32) {
    %c0_i32 = arith.constant 0 : i32
    %c0_i32_0 = arith.constant 0 : i32
    %c0_i32_1 = arith.constant 0 : i32
    %c0_i32_2 = arith.constant 0 : i32
    return %c0_i32, %c0_i32_0, %c0_i32_1 : i32, i32, i32
  }
  func.func @transform_2(%arg0: i32, %arg1: i32) -> (i32, i32) {
    %c1_i32 = arith.constant 1 : i32
    %0 = arith.muli %arg0, %c1_i32 : i32
    %1 = arith.addi %0, %arg1 : i32
    %c0_i32 = arith.constant 0 : i32
    %c0_i32_0 = arith.constant 0 : i32
    return %1, %c0_i32 : i32, i32
  }
  func.func @transform_3(%arg0: i32, %arg1: i32) -> (i32, i32, i32) {
    %c1_i32 = arith.constant 1 : i32
    %0 = arith.muli %arg0, %c1_i32 : i32
    %1 = arith.addi %0, %arg1 : i32
    %c0_i32 = arith.constant 0 : i32
    %c0_i32_0 = arith.constant 0 : i32
    %c0_i32_1 = arith.constant 0 : i32
    return %1, %c0_i32, %c0_i32_0 : i32, i32, i32
  }
  func.func @transform_4(%arg0: i32, %arg1: i32) -> (i32, i32, i32) {
    %c1_i32 = arith.constant 1 : i32
    %0 = arith.muli %arg0, %c1_i32 : i32
    %1 = arith.addi %0, %arg1 : i32
    %c0_i32 = arith.constant 0 : i32
    %c0_i32_0 = arith.constant 0 : i32
    %c0_i32_1 = arith.constant 0 : i32
    return %1, %c0_i32, %c0_i32_0 : i32, i32, i32
  }
}

</mosaic_0001>

<bundles_post_ra>
// kernel: tpu_custom_call.1
= control target key start
LH: loop header
LB: loop body
LE: loop exit
PB: predicated region body
PF: predicated region fallthrough
CT: control target
= control target key end

     0   :  { %10 = vsyncpa [#allocation3], 0  ;;  %s1998_s0 = inlined_call_operand.vmem [shape: bf16[2,9,9,16], index: 0, kind: input, shape index: {}]   ;;  %s1999_s1 = inlined_call_operand.vmem [shape: bf16[4,16,128], index: 1, kind: input, shape index: {}]   ;;  %s2000_s2 = inlined_call_operand.hbm [shape: bf16[128,128], index: 2, kind: output, shape index: {0}]   ;;  %s2001_s3 = inlined_call_operand.hbm [shape: f32[2,1,128], index: 3, kind: output, shape index: {1}]   ;;  %s2002_s4 = inlined_call_operand.hbm [shape: f32[2,1,128], index: 4, kind: output, shape index: {2}]  }
   0x1   :  { %12 = vsyncpa [#allocation3 + $0x1], 0 }
   0x2   :  { %13 = vsyncpa [#allocation5], 0 }
   0x3   :  { %15 = vsyncpa [#allocation5 + $0x1], 0  ;;  %s1647_s15 = smov 0   ;;  %s1649_s16 = smov 0  }
   0x4   :  { %s1651_s17 = smov 0   ;;  %s1653_s18 = smov 0  }
   0x5   :  { %s1655_s19 = smov 0   ;;  %s1657_s20 = smov 0  }
   0x6 LB: > { %s1193_s21 = sadd.s32 4294967295, %s1615_s20   ;;  %s1194_s22 = sadd.s32 4294967294, %s1615_s20   ;;  %s1615_s20 = sphi %s1657_s20, %s21_s20   ;;  %s1611_s19 = sphi %s1655_s19, %s2011_s19   ;;  %s1607_s18 = sphi %s1653_s18, %s2010_s18   ;;  %s1603_s17 = sphi %s1651_s17, %s2009_s17   ;;  %s1599_s16 = sphi %s1649_s16, %s2008_s16   ;;  %s1595_s15 = sphi %s1647_s15, %s2007_s15  }
   0x7   : > { %s33_s23 = sadd.s32 1, %s1611_s19  ;;  %s89_s24 = sadd.s32 1, %s1603_s17 }
   0x8   : > { %p35_p0 = scmp.ge.s32.totalorder %s33_s23, 2  ;;  %p99_p1 = scmp.ne.s32.totalorder %s1603_s17, %s1599_s16 }
   0x9   : > { %p100_p2 = scmp.eq.s32.totalorder %s1193_s21, 1  ;;  %p105_p3 = scmp.ne.s32.totalorder %s1599_s16, %s1595_s15 }
   0xa   : > { %s2013_s23 = smov (%p35_p0, %s33_s23), 0  ;;  %p106_p5 = scmp.eq.s32.totalorder %s1194_s22, 1 }
   0xb   : > { %p1689_p4 = por %p100_p2, %p99_p1  ;;  %s86_s26 = ssub.s32 %s1611_s19, %s2013_s23 }
   0xc   : > { %p1197_p6 = scmp.ge.s32.totalorder %s1615_s20, 1  ;;  %p87_p7 = scmp.eq.s32.totalorder %s86_s26, 0 }
   0xd   : > { %p1698_p8 = por %p106_p5, %p105_p3  ;;  %p191_p9 = scmp.lt.s32.totalorder %s1615_s20, 3 }
   0xe   : > { %s1704_s28 = scalar_select %p87_p7, %s1603_s17, %s89_s24  }
   0xf   : > { %p192_p10 = pnand %p1197_p6, %p191_p9 }
  0x10   : > { %v1465_v0 = vld [vmem:[%s1999_s1 + $0x10] sm:$0xff] (!%p192_p10)   ;;  %p225_p11 = scmp.lt.s32.totalorder (!%p192_p10), %s1607_s18, 1  ;;  %v1468_v1 = vld [vmem:[%s1999_s1 + $0x8] sm:$0xff] (!%p192_p10)   ;;  %v1717_v2 = vld [vmem:[%s1999_s1] sm:$0xff] (!%p192_p10)   ;;  %vm393_vm0 = vcmask (!%p192_p10), 130048   ;;  %s1860_s26 = sand.u32 (!%p192_p10), 1, %s1599_s16  }
  0x11   : > { %195 = sbr.rel (%p192_p10) target bundleno = 367 (0x16f), region = 28  ;;  %1353 = vmatprep.subr.bf16.mxu0 (!%p192_p10), %v1465_v0  ;;  %1333 = vmatprep.subr.bf16.mxu1 (!%p192_p10), %v1468_v1  ;;  %v1472_v3 = vld [vmem:[%s1999_s1 + $0x18] sm:$0xff] (!%p192_p10)   ;;  %vm257_vm1 = vsmask.f32 (!%p192_p10), 3328  ;;  %vm258_vm2 = vsmask.f32 (!%p192_p10), 7440 }
  0x12   : > { %1354 = vmatpush3.bf16.msra.mxu0 (!%p192_p10), %v1465_v0  ;;  %1334 = vmatpush3.bf16.msra.mxu1 (!%p192_p10), %v1468_v1  ;;  %vm1759_vm3 = vmor (!%p192_p10), %vm257_vm1, %vm258_vm2  ;;  %s1198_s29 = sshll.u32 (!%p192_p10), %s1860_s26, 5  ;;  %s1289_s6 = sshll.u32 (!%p192_p10), %s1607_s18, 9 }
  0x13   : > { %1343 = vmatprep.subr.bf16.mxu1 (!%p192_p10), %v1717_v2  ;;  %1363 = vmatprep.subr.bf16.mxu0 (!%p192_p10), %v1472_v3  ;;  %s1863_s30 = scalar_lea.vmem (!%p192_p10), [#allocation2], %s1198_s29  ;;  %s1872_s9 = scalar_lea.hbm (!%p192_p10), %s2000_s2, %s1289_s6 }
  0x14   : > { %s1033_s5 = sshll.u32 (!%p192_p10), %s1863_s30, 4  ;;  %s1617_s12 = smov (!%p192_p10), [#allocation2]   ;;  %s1874_s5 = int_to_ptr.vmem [resolvable:$true] %s1033_s5 }
  0x15   : > { %s1477_s11 = scalar_lea.vmem (!%p192_p10), %s1874_s5, 512  ;;  %s1481_s13 = sshll.u32 (!%p192_p10), %s1617_s12, 4  ;;  %s1482_s13 = int_to_ptr.vmem [resolvable:$false] %s1481_s13 }
  0x16   : > { %p1478_p12 = scmp.ne.s32.totalorder (!%p192_p10), %s1874_s5, %s1477_s11  ;;  %s1483_s14 = scalar_lea.vmem (!%p192_p10), %s1482_s13, 1024 }
  0x17   : > { %p1484_p1 = scmp.lt.s32.totalorder (!%p192_p10), %s1874_s5, %s1482_s13  ;;  %p1485_p2 = scmp.lt.s32.totalorder (!%p192_p10), %s1483_s14, %s1477_s11 }
  0x18   : > { %s226_s7 = scalar_select %p225_p11, %s1607_s18, 1 }
  0x19   : > { %p1479_p13 = pnand %p1478_p12, %p1689_p4  ;;  %p1486_p3 = por %p1485_p2, %p1484_p1 }
  0x1a   : > { %s1397_s10 = smul.u32 72, %s226_s7 }
  0x1b   : > { %p1480_p0 = pneg %p1479_p13 }
  0x1c   : > { %s1726_s24 = scalar_lea.vmem %s1998_s0, %s1397_s10  ;;  %s1011_s10 = scalar_lea.sflag [#allocation3], %s1860_s26 }
  0x1d   : > { %v1466_v4 = vld [vmem:[%s1726_s24 + $0x8] ss:$8 sps:$4 sm:$0xff]   ;;  %v1467_v5 = vld [vmem:[%s1726_s24 + $0x18] ss:$8 sps:$4 sm:$0xff]   ;;  %v249_v9 = vld [vmem:[%s1726_s24 + $0x4] sm:$0x1]  ;;  %p1487_p5 = pnand %p1486_p3, %p1480_p0 }
  0x1e   : > { %1355 = vmatprep.mubr.msk.bf16.mxu0 %vm393_vm0, %v1466_v4  ;;  %v1469_v6 = vld [vmem:[%s1726_s24 + $0x28] ss:$8 sps:$4 sm:$0xff]   ;;  %v1734_v7 = vld [vmem:[%s1726_s24] sm:$0xf]  ;;  %v250_v10 = vld [vmem:[%s1726_s24 + $0xc] sm:$0x1] }
  0x1f   : > { %1356 = vmatmul.mubr.msk.bf16.vlgmr.msra.gmra.mrb[0].mxu0 %vm393_vm0, %v1467_v5  ;;  %v1737_v8 = vld [vmem:[%s1726_s24 + $0x8] sm:$0xf]  ;;  %v261_v11 = vshrl.u32 %v1734_v7, 16  ;;  %v264_v12 = vshll.u32 %v1734_v7, 16  ;;  %v270_v13 = vshll.u32 %v249_v9, 16  ;;  %v284_v16 = vshll.u32 %v250_v10, 16 }
  0x20   : > { %1359 = vmatprep.mubr.msk.bf16.mxu0 %vm393_vm0, %v1469_v6  ;;  %v275_v14 = vshrl.u32 %v1737_v8, 16  ;;  %1364 = vmatpush3.bf16.msra.mxu0 %v1472_v3  ;;  %v278_v15 = vshll.u32 %v1737_v8, 16  ;;  %v1471_v21 = vld [vmem:[%s1726_s24 + $0x38] ss:$8 sps:$4 sm:$0xff]   ;;  %v1748_v24 = vld [vmem:[%s1726_s24 + $0x10] sm:$0xf] }
  0x21   : > { %v263_v17 = vrot.slane %v261_v11, 4  ;;  %v266_v18 = vrot.slane %v264_v12, 5  ;;  %v272_v19 = vrot.slane %v270_v13, 5  ;;  %v286_v23 = vrot.slane %v284_v16, 5  ;;  %v1751_v25 = vld [vmem:[%s1726_s24 + $0x18] sm:$0xf] }
  0x22   : > { %v277_v20 = vrot.slane %v275_v14, 4  ;;  %v280_v22 = vrot.slane %v278_v15, 5  ;;  %v251_v27 = vld [vmem:[%s1726_s24 + $0x14] sm:$0x1]  ;;  %v252_v28 = vld [vmem:[%s1726_s24 + $0x1c] sm:$0x1] }
  0x23   : > { %v267_v26 = vor.u32 %v266_v18, %v263_v17  ;;  %v289_v29 = vshrl.u32 %v1748_v24, 16  ;;  %v292_v30 = vshll.u32 %v1748_v24, 16  ;;  %v298_v33 = vshll.u32 %v251_v27, 16  ;;  %v1239_v36 = vld [vmem:[%s1726_s24 + $0x8] sm:$0xf] }
  0x24   : > { %v281_v32 = vor.u32 %v280_v22, %v277_v20  ;;  %v303_v34 = vshrl.u32 %v1751_v25, 16  ;;  %v306_v35 = vshll.u32 %v1751_v25, 16  ;;  %v312_v40 = vshll.u32 %v252_v28, 16  ;;  %v1240_v41 = vld [vmem:[%s1726_s24 + $0xc] sm:$0x1] }
  0x25   : > { %v268_v37 = vrot.slane %v267_v26, 4  ;;  %v291_v38 = vrot.slane %v289_v29, 4  ;;  %v294_v39 = vrot.slane %v292_v30, 5  ;;  %v300_v43 = vrot.slane %v298_v33, 5  ;;  %v1241_v46 = vld [vmem:[%s1726_s24 + $0x10] sm:$0xf] }
  0x26   : > { %v282_v42 = vrot.slane %v281_v32, 4  ;;  %v305_v44 = vrot.slane %v303_v34, 4  ;;  %v308_v45 = vrot.slane %v306_v35, 5  ;;  %v314_v49 = vrot.slane %v312_v40, 5  ;;  %v1242_v53 = vld [vmem:[%s1726_s24 + $0x14] sm:$0x1] }
  0x27   : > { %1360 = vmatmul.mubr.msk.bf16.gmra.mrb[4].mxu0 %vm393_vm0, %v1471_v21  ;;  %v273_v47 = vsel %vm1759_vm3, %v268_v37, %v272_v19  ;;  %v295_v48 = vor.u32 %v294_v39, %v291_v38  ;;  %v717_v50 = vshrl.u32 %v1239_v36, 16  ;;  %v720_v54 = vshll.u32 %v1239_v36, 16  ;;  %v1775_v56 = vld [vmem:[%s1726_s24 + $0x20] sm:$0xf]  ;;  %v253_v1 = vld [vmem:[%s1726_s24 + $0x24] sm:$0x1] }
  0x28   : > { %v287_v51 = vsel %vm1759_vm3, %v282_v42, %v286_v23  ;;  %v309_v52 = vor.u32 %v308_v45, %v305_v44  ;;  %v726_v55 = vshll.u32 %v1240_v41, 16  ;;  %v731_v60 = vshrl.u32 %v1241_v46, 16  ;;  %v1782_v6 = vld [vmem:[%s1726_s24 + $0x28] sm:$0xf]  ;;  %v254_v13 = vld [vmem:[%s1726_s24 + $0x2c] sm:$0x1] }
  0x29   : > { %v1202_v57 = vcombine.low %v273_v47, %v287_v51  ;;  %v296_v58 = vrot.slane %v295_v48, 4  ;;  %v719_v59 = vrot.slane %v717_v50, 4  ;;  %v722_v62 = vrot.slane %v720_v54, 5  ;;  %v1243_v15 = vld [vmem:[%s1726_s24 + $0x18] sm:$0xf] }
  0x2a   : > { %v310_v61 = vrot.slane %v309_v52, 4  ;;  %v728_v63 = vrot.slane %v726_v55, 5  ;;  %v734_v0 = vshll.u32 %v1241_v46, 16  ;;  %v733_v4 = vrot.slane %v731_v60, 4  ;;  %v1244_v26 = vld [vmem:[%s1726_s24 + $0x1c] sm:$0x1] }
  0x2b   : > { %1335 = vmatprep.mubr.msk.bf16.mxu1 %vm393_vm0, %v1202_v57  ;;  %v301_v3 = vsel %vm1759_vm3, %v296_v58, %v300_v43  ;;  %v740_v5 = vshll.u32 %v1242_v53, 16  ;;  %v317_v9 = vshrl.u32 %v1775_v56, 16  ;;  %v723_v11 = vor.u32 %v722_v62, %v719_v59  ;;  %v1245_v30 = vld [vmem:[%s1726_s24 + $0x20] sm:$0xf]  ;;  %v1246_v39 = vld [vmem:[%s1726_s24 + $0x24] sm:$0x1] }
  0x2c   : > { %v315_v10 = vsel %vm1759_vm3, %v310_v61, %v314_v49  ;;  %v736_v12 = vrot.slane %v734_v0, 5  ;;  %v320_v14 = vshll.u32 %v1775_v56, 16  ;;  %v326_v19 = vshll.u32 %v253_v1, 16  ;;  %v1805_v50 = vld [vmem:[%s1726_s24 + $0x38] sm:$0xf] }
  0x2d   : > { %v1203_v16 = vcombine.low %v301_v3, %v315_v10  ;;  %v742_v17 = vrot.slane %v740_v5, 5  ;;  %v319_v18 = vrot.slane %v317_v9, 4  ;;  %v724_v20 = vrot.slane %v723_v11, 4  ;;  %v255_v51 = vld [vmem:[%s1726_s24 + $0x34] sm:$0x1] }
  0x2e   : > { %v737_v21 = vor.u32 %v736_v12, %v733_v4  ;;  %v322_v22 = vrot.slane %v320_v14, 5  ;;  %v331_v23 = vshrl.u32 %v1782_v6, 16  ;;  %v328_v27 = vrot.slane %v326_v19, 5  ;;  %v256_v62 = vld [vmem:[%s1726_s24 + $0x3c] sm:$0x1] }
  0x2f   : > { %1336 = vmatmul.mubr.msk.bf16.vlgmr.msra.gmra.mrb[0].mxu1 %vm393_vm0, %v1203_v16  ;;  %v334_v28 = vshll.u32 %v1782_v6, 16  ;;  %v340_v29 = vshll.u32 %v254_v13, 16  ;;  %v745_v32 = vshrl.u32 %v1243_v15, 16  ;;  %v729_v33 = vsel %vm1759_vm3, %v724_v20, %v728_v63  ;;  %v1247_v10 = vld [vmem:[%s1726_s24 + $0x28] sm:$0xf] }
  0x30   : > { %1344 = vmatpush3.bf16.msra.mxu1 %v1717_v2  ;;  %v738_v34 = vrot.slane %v737_v21, 4  ;;  %v323_v35 = vor.u32 %v322_v22, %v319_v18  ;;  %v333_v36 = vrot.slane %v331_v23, 4  ;;  %v748_v41 = vshll.u32 %v1243_v15, 16  ;;  %v1802_v2 = vld [vmem:[%s1726_s24 + $0x30] sm:$0xf] }
  0x31   : > { %v336_v37 = vrot.slane %v334_v28, 5  ;;  %v342_v38 = vrot.slane %v340_v29, 5  ;;  %v747_v40 = vrot.slane %v745_v32, 4  ;;  %v754_v44 = vshll.u32 %v1244_v26, 16  ;;  %v1248_v11 = vld [vmem:[%s1726_s24 + $0x2c] sm:$0x1] }
  0x32   : > { %v743_v42 = vsel %vm1759_vm3, %v738_v34, %v742_v17  ;;  %v324_v43 = vrot.slane %v323_v35, 4  ;;  %v759_v45 = vshrl.u32 %v1245_v30, 16  ;;  %v750_v48 = vrot.slane %v748_v41, 5  ;;  %v1249_v15 = vld [vmem:[%s1726_s24 + $0x30] sm:$0xf] }
  0x33   : > { %v1257_v46 = vcombine.low %v729_v33, %v743_v42  ;;  %v337_v47 = vor.u32 %v336_v37, %v333_v36  ;;  %v762_v49 = vshll.u32 %v1245_v30, 16  ;;  %v756_v53 = vrot.slane %v754_v44, 5  ;;  %v1250_v22 = vld [vmem:[%s1726_s24 + $0x34] sm:$0x1]  ;;  %v1251_v30 = vld [vmem:[%s1726_s24 + $0x38] sm:$0xf] }
  0x34   : > { %v329_v52 = vsel %vm1759_vm3, %v324_v43, %v328_v27  ;;  %v761_v54 = vrot.slane %v759_v45, 4  ;;  %v768_v55 = vshll.u32 %v1246_v39, 16  ;;  %v751_v58 = vor.u32 %v750_v48, %v747_v40  ;;  %v1252_v36 = vld [vmem:[%s1726_s24 + $0x3c] sm:$0x1]  ;;  %v1253_v41 = vld [vmem:[%s1726_s24 + $0x40] sm:$0xf] }
  0x35   : > { %1365 = vmatprep.mubr.msk.bf16.mxu0 %vm393_vm0, %v1257_v46  ;;  %v338_v57 = vrot.slane %v337_v47, 4  ;;  %v764_v59 = vrot.slane %v762_v49, 5  ;;  %v345_v60 = vshrl.u32 %v1802_v2, 16  ;;  %v348_v63 = vshll.u32 %v1802_v2, 16 }
  0x36   : > { %v770_v61 = vrot.slane %v768_v55, 5  ;;  %v354_v0 = vshll.u32 %v255_v51, 16  ;;  %v359_v1 = vshrl.u32 %v1805_v50, 16  ;;  %v752_v4 = vrot.slane %v751_v58, 4 }
  0x37   : > { %v343_v3 = vsel %vm1759_vm3, %v338_v57, %v342_v38  ;;  %v765_v5 = vor.u32 %v764_v59, %v761_v54  ;;  %v347_v9 = vrot.slane %v345_v60, 4  ;;  %v350_v13 = vrot.slane %v348_v63, 5 }
  0x38   : > { %v1204_v12 = vcombine.low %v329_v52, %v343_v3  ;;  %v361_v14 = vrot.slane %v359_v1, 4  ;;  %v1211_v16 = vcombine.low %v1734_v7, %v1737_v8  ;;  %v757_v17 = vsel %vm1759_vm3, %v752_v4, %v756_v53  ;;  %v1254_v52 = vld [vmem:[%s1726_s24 + $0x44] sm:$0x1] }
  0x39   : > { %v766_v18 = vrot.slane %v765_v5, 4  ;;  %v362_v19 = vshll.u32 %v1805_v50, 16  ;;  %v368_v20 = vshll.u32 %v256_v62, 16  ;;  %v351_v21 = vor.u32 %v350_v13, %v347_v9 }
  0x3a   : > { %1339 = vmatprep.mubr.msk.bf16.mxu1 %vm393_vm0, %v1204_v12  ;;  %v773_v23 = vshrl.u32 %v1247_v10, 16  ;;  %v776_v26 = vshll.u32 %v1247_v10, 16  ;;  %v782_v27 = vshll.u32 %v1248_v11, 16  ;;  %v356_v7 = vrot.slane %v354_v0, 5 }
  0x3b   : > { %v771_v28 = vsel %vm1759_vm3, %v766_v18, %v770_v61  ;;  %v364_v8 = vrot.slane %v362_v19, 5  ;;  %v787_v29 = vshrl.u32 %v1249_v15, 16  ;;  %v352_v33 = vrot.slane %v351_v21, 4 }
  0x3c   : > { %v1258_v32 = vcombine.low %v757_v17, %v771_v28  ;;  %v775_v34 = vrot.slane %v773_v23, 4  ;;  %v778_v35 = vrot.slane %v776_v26, 5  ;;  %v370_v38 = vrot.slane %v368_v20, 5 }
  0x3d   : > { %v365_v37 = vor.u32 %v364_v8, %v361_v14  ;;  %v789_v39 = vrot.slane %v787_v29, 4  ;;  %v790_v40 = vshll.u32 %v1249_v15, 16  ;;  %v784_v43 = vrot.slane %v782_v27, 5 }
  0x3e   : > { %1366 = vmatmul.mubr.msk.bf16.vlgmr.msra.gmra.mrb[0].mxu0 %vm393_vm0, %v1258_v32  ;;  %v779_v42 = vor.u32 %v778_v35, %v775_v34  ;;  %v796_v44 = vshll.u32 %v1250_v22, 16  ;;  %v801_v45 = vshrl.u32 %v1251_v30, 16  ;;  %v357_v46 = vsel %vm1759_vm3, %v352_v33, %v356_v7 }
  0x3f   : > { %v366_v47 = vrot.slane %v365_v37, 4  ;;  %v792_v48 = vrot.slane %v790_v40, 5  ;;  %v804_v49 = vshll.u32 %v1251_v30, 16  ;;  %v810_v54 = vshll.u32 %v1252_v36, 16 }
  0x40   : > { %v780_v51 = vrot.slane %v779_v42, 4  ;;  %v803_v53 = vrot.slane %v801_v45, 4  ;;  %v815_v55 = vshrl.u32 %v1253_v41, 16  ;;  %v798_v59 = vrot.slane %v796_v44, 5 }
  0x41   : > { %v371_v57 = vsel %vm1759_vm3, %v366_v47, %v370_v38  ;;  %v793_v58 = vor.u32 %v792_v48, %v789_v39  ;;  %v806_v60 = vrot.slane %v804_v49, 5  ;;  %v818_v63 = vshll.u32 %v1253_v41, 16 }
  0x42   : > { %v1205_v61 = vcombine.low %v357_v46, %v371_v57  ;;  %v817_v62 = vrot.slane %v815_v55, 4  ;;  %v785_v0 = vsel %vm1759_vm3, %v780_v51, %v784_v43  ;;  %v824_v4 = vshll.u32 %v1254_v52, 16 }
  0x43   : > { %v794_v1 = vrot.slane %v793_v58, 4  ;;  %v807_v3 = vor.u32 %v806_v60, %v803_v53  ;;  %v812_v5 = vrot.slane %v810_v54, 5  ;;  %v820_v9 = vrot.slane %v818_v63, 5 }
  0x44   : > { %1340 = vmatmul.mubr.msk.bf16.gmra.mrb[4].mxu1 %vm393_vm0, %v1205_v61  ;;  %v826_v14 = vrot.slane %v824_v4, 5  ;;  %v1212_v18 = vcombine.low %v1748_v24, %v1751_v25  ;;  %v1213_v19 = vcombine.low %v1775_v56, %v1782_v6  ;;  %v1214_v21 = vcombine.low %v1802_v2, %v1805_v50 }
  0x45   : > { %v799_v10 = vsel %vm1759_vm3, %v794_v1, %v798_v59  ;;  %1345 = vmatprep.mubr.msk.bf16.mxu1 %vm393_vm0, %v1211_v16  ;;  %v808_v11 = vrot.slane %v807_v3, 4  ;;  %v821_v13 = vor.u32 %v820_v9, %v817_v62 }
  0x46   : > { %v1259_v12 = vcombine.low %v785_v0, %v799_v10 }
  0x47   : > { %v813_v15 = vsel %vm1759_vm3, %v808_v11, %v812_v5  ;;  %v822_v17 = vrot.slane %v821_v13, 4 }
  0x48   : > { %1369 = vmatprep.mubr.msk.bf16.mxu0 %vm393_vm0, %v1259_v12 }
  0x49   : > { %v827_v16 = vsel %vm1759_vm3, %v822_v17, %v826_v14 }
  0x4a   : > { %v1260_v20 = vcombine.low %v813_v15, %v827_v16 }
  0x4c   : > { %1346 = vmatmul.mubr.msk.bf16.vlgmr.msra.gmra.mrb[0].mxu1 %vm393_vm0, %v1212_v18  ;;  %1370 = vmatmul.mubr.msk.bf16.gmra.mrb[4].mxu0 %vm393_vm0, %v1260_v20 }
  0x4d   : > { %1349 = vmatprep.mubr.msk.bf16.mxu1 %vm393_vm0, %v1213_v19 }
  0x54   : > { %1350 = vmatmul.mubr.msk.bf16.gmra.mrb[4].mxu1 %vm393_vm0, %v1214_v21 }
 0x111   : > { %v1367_v22 = vpop.f32.mrb[0].mxu0 }
 0x112   : > { %v895_v24 = vpop.f32.mrb[1].mxu0 }
 0x113   : > { %v1368_v25 = vpop.f32.mrb[2].mxu0 }
 0x114   : > { %v898_v23 = vpop.f32.mrb[3].mxu0 }
 0x11f   : > { %v1347_v31 = vpop.f32.mrb[0].mxu1  ;;  %v1371_v56 = vpop.f32.mrb[4].mxu0 }
 0x120   : > { %v1373_v6 = vadd.f32 %v1367_v22, %v1347_v31  ;;  %v543_v26 = vpop.f32.mrb[1].mxu1  ;;  %v911_v27 = vpop.f32.mrb[5].mxu0 }
 0x121   : > { %v1374_v28 = vadd.f32 %v895_v24, %v543_v26  ;;  %v1348_v7 = vpop.f32.mrb[2].mxu1  ;;  %v1372_v8 = vpop.f32.mrb[6].mxu0 }
 0x122   : > { %v1375_v29 = vadd.f32 %v1368_v25, %v1348_v7  ;;  %v546_v2 = vpop.f32.mrb[3].mxu1  ;;  %v914_v50 = vpop.f32.mrb[7].mxu0  ;;  %v950_v37 = vmul.f32 %v1373_v6, %v1373_v6 }
 0x123   : > { %v1376_v30 = vadd.f32 %v898_v23, %v546_v2  ;;  %v948_v33 = vmul.f32 %v1374_v28, %v1374_v28 }
 0x124   : > { %v1298_v32 = vpack.c.bf16 %v1375_v29, %v1373_v6  ;;  %v951_v43 = vmul.f32 %v1375_v29, %v1375_v29 }
 0x125   : > { %v934_v34 = vadd.f32 %v1376_v30, %v1374_v28  ;;  %v949_v35 = vmul.f32 %v1376_v30, %v1376_v30  ;;  %v1293_v36 = vpack.c.bf16 %v1376_v30, %v1374_v28 }
 0x126   : > { %1310 = vst [vmem:[%s1863_s30 + $0x8] sm:$0xff] %v1298_v32  }
 0x127   : > { %v935_v38 = vadd.f32 %v1373_v6, %v934_v34  ;;  %v956_v39 = vadd.f32 %v949_v35, %v948_v33  ;;  %1294 = vst [vmem:[%s1863_s30] sm:$0xff] %v1293_v36   ;;  %v1351_v40 = vpop.f32.mrb[4].mxu1 }
 0x128   : > { %v1377_v41 = vadd.f32 %v1371_v56, %v1351_v40  ;;  %v559_v42 = vpop.f32.mrb[5].mxu1 }
 0x129   : > { %v957_v44 = vadd.f32 %v956_v39, %v950_v37  ;;  %v1378_v45 = vadd.f32 %v911_v27, %v559_v42  ;;  %v936_v46 = vadd.f32 %v1375_v29, %v935_v38  ;;  %v1352_v47 = vpop.f32.mrb[6].mxu1 }
 0x12a   : > { %v1379_v48 = vadd.f32 %v1372_v8, %v1352_v47  ;;  %v562_v49 = vpop.f32.mrb[7].mxu1  ;;  %v954_v61 = vmul.f32 %v1377_v41, %v1377_v41 }
 0x12b   : > { %v937_v51 = vadd.f32 %v1378_v45, %v936_v46  ;;  %v952_v52 = vmul.f32 %v1378_v45, %v1378_v45  ;;  %v958_v53 = vadd.f32 %v957_v44, %v951_v43  ;;  %v1380_v54 = vadd.f32 %v914_v50, %v562_v49 }
 0x12c   : > { %v1308_v55 = vpack.c.bf16 %v1379_v48, %v1377_v41 }
 0x12d   : > { %v959_v57 = vadd.f32 %v958_v53, %v952_v52  ;;  %v938_v58 = vadd.f32 %v1380_v54, %v937_v51  ;;  %v953_v59 = vmul.f32 %v1380_v54, %v1380_v54  ;;  %v1303_v60 = vpack.c.bf16 %v1380_v54, %v1378_v45 }
 0x12e   : > { %1312 = vst [vmem:[%s1863_s30 + $0x18] sm:$0xff] %v1308_v55  }
 0x12f   : > { %v939_v62 = vadd.f32 %v1377_v41, %v938_v58  ;;  %v960_v63 = vadd.f32 %v959_v57, %v953_v59  ;;  %1311 = vst [vmem:[%s1863_s30 + $0x10] sm:$0xff] %v1303_v60  }
 0x130   : > { %1490 = shalt.err (!%p1487_p5)
}
 0x131   : > { %s1491_s24 = scalar_lea.hbm %s1872_s9, 512  ;;  %s1495_s6 = scalar_lea.hbm %s2000_s2, 1024 }
 0x132   : > { %p1492_p6 = scmp.ne.s32.totalorder %s1872_s9, %s1491_s24  ;;  %p1496_p10 = scmp.lt.u32.totalorder %s1872_s9, %s2000_s2 }
 0x133   : > { %p1497_p11 = scmp.lt.u32.totalorder %s1495_s6, %s1491_s24  ;;  %p1499_p13 = scmp.lt.u32.totalorder %s1491_s24, %s1872_s9 }
 0x134   : > { %p1493_p7 = pnand %p1492_p6, %p1689_p4 }
 0x135   : > { %p1498_p12 = por %p1497_p11, %p1496_p10 }
 0x136   : > { %p1494_p9 = pneg %p1493_p7 }
 0x137   : > { %p1500_p0 = por %p1499_p13, %p1498_p12 }
 0x139   : > { %p1501_p1 = pnand %p1500_p0, %p1494_p9 }
 0x13b   : > { %1504 = shalt.err (!%p1501_p1)
}
 0x13c   : > { %s1618_s11 = smov 64   ;;  %s1619_s12 = smov 4   ;;  %v955_v0 = vmul.f32 %v1379_v48, %v1379_v48  ;;  %v940_v1 = vadd.f32 %v1379_v48, %v939_v62  ;;  %v961_v3 = vadd.f32 %v960_v63, %v954_v61 }
 0x13d   : > { %1398 = dma.vmem_to_hbm [thread:$0]  (%p1689_p4), %s1874_s5, 512, %s1872_s9, %s1011_s10, %s1618_s11, %s1618_s11, %s1619_s12  }
 0x13e   : > { %v941_v4 = vrot.slane %v940_v1, 4  ;;  %v962_v5 = vadd.f32 %v961_v3, %v955_v0  ;;  %s1904_s13 = sand.u32 1, %s1193_s21   ;;  %s1277_s14 = sshll.u32 %s1607_s18, 4 }
 0x13f   : > { %s218_s24 = scalar_lea.vmem [#allocation4], %s1860_s26  ;;  %s224_s9 = scalar_lea.vmem [#allocation6], %s1860_s26 }
 0x140   : > { %v963_v9 = vrot.slane %v962_v5, 4  ;;  %v942_v10 = vadd.f32 %v941_v4, %v940_v1  ;;  %s1050_s5 = sshll.u32 %s218_s24, 4  ;;  %s1064_s10 = sshll.u32 %s224_s9, 4  ;;  %s1916_s5 = int_to_ptr.vmem [resolvable:$true] %s1050_s5  ;;  %s1923_s10 = int_to_ptr.vmem [resolvable:$true] %s1064_s10 }
 0x141   : > { %s1914_s6 = scalar_lea.hbm %s2001_s3, %s1277_s14  ;;  %s1921_s7 = scalar_lea.hbm %s2002_s4, %s1277_s14 }
 0x142   : > { %v943_v11 = vrot.slane %v942_v10, 2  ;;  %v964_v12 = vadd.f32 %v963_v9, %v962_v5  ;;  %s1016_s8 = scalar_lea.sflag [#allocation5], %s1904_s13  ;;  %s1505_s11 = scalar_lea.vmem %s1916_s5, 16 }
 0x143   : > { %p1506_p2 = scmp.ne.s32.totalorder %s1916_s5, %s1505_s11  ;;  %s1620_s12 = smov [#allocation4]  }
 0x144   : > { %v944_v13 = vadd.f32 %v943_v11, %v942_v10  ;;  %v965_v14 = vrot.slane %v964_v12, 2  ;;  %s1509_s29 = sshll.u32 %s1620_s12, 4  ;;  %s1510_s29 = int_to_ptr.vmem [resolvable:$false] %s1509_s29 }
 0x145   : > { %p1507_p3 = pnand %p1506_p2, %p1689_p4  ;;  %s1511_s30 = scalar_lea.vmem %s1510_s29, 32 }
 0x146   : > { %v945_v15 = vrot.slane %v944_v13, 1  ;;  %v966_v17 = vadd.f32 %v965_v14, %v964_v12  ;;  %p1512_p6 = scmp.lt.s32.totalorder %s1916_s5, %s1510_s29  ;;  %p1513_p7 = scmp.lt.s32.totalorder %s1511_s30, %s1505_s11 }
 0x147   : > { %p1508_p5 = pneg %p1507_p3 }
 0x148   : > { %v946_v18 = vadd.f32 %v945_v15, %v944_v13  ;;  %v967_v19 = vrot.slane %v966_v17, 1  ;;  %p1514_p9 = por %p1513_p7, %p1512_p6 }
 0x14a   : > { %947 = vst [vmem:[%s218_s24] sm:$0x1] %v946_v18  ;;  %v968_v16 = vadd.f32 %v967_v19, %v966_v17  ;;  %p1515_p10 = pnand %p1514_p9, %p1508_p5 }
 0x14c   : > { %1518 = shalt.err (!%p1515_p10)
}
 0x14d   : > { %s1519_s14 = scalar_lea.hbm %s1914_s6, 16  ;;  %s1523_s21 = scalar_lea.hbm %s2001_s3, 32 }
 0x14e   : > { %p1520_p11 = scmp.ne.s32.totalorder %s1914_s6, %s1519_s14  ;;  %p1524_p0 = scmp.lt.u32.totalorder %s1914_s6, %s2001_s3 }
 0x14f   : > { %p1525_p1 = scmp.lt.u32.totalorder %s1523_s21, %s1519_s14  ;;  %p1527_p3 = scmp.lt.u32.totalorder %s1519_s14, %s1914_s6 }
 0x150   : > { %p1521_p12 = pnand %p1520_p11, %p1689_p4 }
 0x151   : > { %p1526_p2 = por %p1525_p1, %p1524_p0 }
 0x152   : > { %p1522_p13 = pneg %p1521_p12 }
 0x153   : > { %p1528_p5 = por %p1527_p3, %p1526_p2 }
 0x155   : > { %p1529_p6 = pnand %p1528_p5, %p1522_p13 }
 0x157   : > { %1532 = shalt.err (!%p1529_p6)
}
 0x158   : > { %1399 = dma.vmem_to_hbm [thread:$0]  (%p1689_p4), %s1916_s5, 16, %s1914_s6, %s1016_s8   ;;  %969 = vst [vmem:[%s224_s9] sm:$0x1] %v968_v16 }
 0x159   : > { %s1533_s11 = scalar_lea.vmem %s1923_s10, 16  ;;  %s1621_s30 = smov [#allocation6]  }
 0x15a   : > { %p1534_p7 = scmp.ne.s32.totalorder %s1923_s10, %s1533_s11  ;;  %s1537_s14 = sshll.u32 %s1621_s30, 4  ;;  %s1538_s14 = int_to_ptr.vmem [resolvable:$false] %s1537_s14 }
 0x15b   : > { %s1539_s24 = scalar_lea.vmem %s1538_s14, 32  ;;  %p1540_p11 = scmp.lt.s32.totalorder %s1923_s10, %s1538_s14 }
 0x15c   : > { %p1535_p9 = pnand %p1534_p7, %p1689_p4  ;;  %p1541_p12 = scmp.lt.s32.totalorder %s1539_s24, %s1533_s11 }
 0x15e   : > { %p1536_p10 = pneg %p1535_p9  ;;  %p1542_p13 = por %p1541_p12, %p1540_p11 }
 0x160   : > { %p1543_p0 = pnand %p1542_p13, %p1536_p10 }
 0x162   : > { %1546 = shalt.err (!%p1543_p0)
}
 0x163   : > { %s1547_s26 = scalar_lea.hbm %s1921_s7, 16  ;;  %s1551_s6 = scalar_lea.hbm %s2002_s4, 32 }
 0x164   : > { %p1548_p1 = scmp.ne.s32.totalorder %s1921_s7, %s1547_s26  ;;  %p1552_p5 = scmp.lt.u32.totalorder %s1921_s7, %s2002_s4 }
 0x165   : > { %p1553_p6 = scmp.lt.u32.totalorder %s1551_s6, %s1547_s26  ;;  %p1555_p9 = scmp.lt.u32.totalorder %s1547_s26, %s1921_s7 }
 0x166   : > { %p1549_p2 = pnand %p1548_p1, %p1689_p4 }
 0x167   : > { %p1554_p7 = por %p1553_p6, %p1552_p5 }
 0x168   : > { %p1550_p3 = pneg %p1549_p2 }
 0x169   : > { %p1556_p10 = por %p1555_p9, %p1554_p7 }
 0x16b   : > { %p1557_p11 = pnand %p1556_p10, %p1550_p3 }
 0x16d   : > { %1560 = shalt.err (!%p1557_p11)
}
 0x16e   : > { %1400 = dma.vmem_to_hbm [thread:$0]  (%p1689_p4), %s1923_s10, 16, %s1921_s7, %s1016_s8  }
 0x16f PF: > { %p1414_p12 = scmp.ge.s32.totalorder %s1615_s20, 2  ;;  %s1076_s12 = sand.u32 1, %s1595_s15  }
 0x170   : > { %s1077_s29 = scalar_lea.sflag [#allocation3], %s1076_s12 }
 0x171   : > { %p1405_p13 = pnand %p1414_p12, %p1698_p8 }
 0x173   : > { %1586 = dma.done.wait (!%p1405_p13), %s1077_s29, 512  }
 0x174   : > { %1588 = vsyncadd (!%p1405_p13), %s1077_s29, 4294966784  ;;  %s1085_s11 = sand.u32 1, %s1194_s22  }
 0x175   : > { %s1086_s25 = scalar_lea.sflag [#allocation5], %s1085_s11 }
 0x176   : > { %1590 = dma.done.wait (!%p1405_p13), %s1086_s25, 32  }
 0x177   : > { %1592 = vsyncadd (!%p1405_p13), %s1086_s25, 4294967264  ;;  %s21_s20 = sadd.s32 1, %s1615_s20   ;;  %s2007_s15 = smov %s1599_s16 }
 0x178   : > { %p18_p4 = scmp.ge.s32.totalorder %s21_s20, 4   ;;  %s2008_s16 = smov %s1603_s17 }
 0x179   : > { %s2009_s17 = smov %s1704_s28  ;;  %s2010_s18 = smov %s1611_s19 }
 0x17a   : > { %s2011_s19 = smov %s2013_s23  ;;  %20 = sbr.rel (!%p18_p4) target bundleno = 6 (0x6), region = 100 }
 0x181   :  { %1098 = vsyncpa [#allocation3], 1 }
 0x182   :  { %1100 = vsyncpa [#allocation3 + $0x1], 1 }
 0x183   :  { %1101 = vsyncpa [#allocation5], 1 }
 0x184   :  { %1103 = vsyncpa [#allocation5 + $0x1], 1 }

</bundles_post_ra>
